<compile_context>
chip_gen: v7x
topology: tpu7x:2x2x1
jax: 0.10.0
libtpu: 0.0.40
codegen_flags: <defaults>
</compile_context>

<pallas_src>
import functools

import jax
import jax.numpy as jnp
from jax.experimental import pallas as pl
from jax.experimental.pallas import tpu as pltpu


# Tap table in (kh, kw) row-major order: (parity plane, row offset, col offset)
# inside the stacked, top/left-padded parity block.
# Planes: 0 = even rows/even cols, 1 = even/odd, 2 = odd/even, 3 = odd/odd.
_TAPS = (
    (3, 0, 0),  # (kh, kw) = (0, 0)
    (2, 0, 1),  # (0, 1)
    (3, 0, 1),  # (0, 2)
    (1, 1, 0),  # (1, 0)
    (0, 1, 1),  # (1, 1)
    (1, 1, 1),  # (1, 2)
    (3, 1, 0),  # (2, 0)
    (2, 1, 1),  # (2, 1)
    (3, 1, 1),  # (2, 2)
)


def conv2d_compress_kernel(p_ref, w_ref, ab_ref, o_ref, col_ref):
    """One (image, row-tile) step of fused 3x3/s2 conv + folded BN + ReLU.

    p_ref:   (4*(th+1), Wo+1, Cin) bf16 — four parity planes (each th+1 padded
             rows for this row tile, incl. the 1-row halo), stacked row-wise.
    w_ref:   (9*Cin, Cout) bf16 conv weight, K index = (kh*3 + kw)*Cin + cin.
    ab_ref:  (2, Cout) f32 folded BN: row 0 = scale, row 1 = bias.
    o_ref:   (th*Wo, Cout) output block (stored directly, no reshape).
    col_ref: (th, Wo, 9*Cin) bf16 im2col scratch (fully rewritten each step).
    """
    th, wo, k9cin = col_ref.shape
    cin = k9cin // 9
    plane_rows = p_ref.shape[0] // 4          # th + 1

    # Nine contiguous, unit-stride tap copies into the im2col buffer (bf16).
    for k, (plane, r0, c0) in enumerate(_TAPS):
        base = plane * plane_rows
        col_ref[:, :, k * cin:(k + 1) * cin] = \
            p_ref[base + r0: base + r0 + th, c0: c0 + wo, :]

    # Single fused contraction over K = 9*Cin, bf16 operands, f32 accumulation.
    # Leading-dim merge only (lane dim untouched); free re-tiling for Wo % 8 == 0.
    col = col_ref[...].reshape(th * wo, k9cin)
    y = jnp.dot(col, w_ref[...], preferred_element_type=jnp.float32)

    # Folded BatchNorm (eval) + ReLU in f32: one FMA + max.
    y = jnp.maximum(y * ab_ref[0:1, :] + ab_ref[1:2, :], 0.0)
    o_ref[...] = y.astype(o_ref.dtype)


# --------------------------------------------------------------------------
# Generation-aware block sizing.
# --------------------------------------------------------------------------
def _round_up(x, m):
    return (x + m - 1) // m * m


def _vmem_capacity_bytes():
    try:
        cap = int(getattr(pltpu.get_tpu_info(), "vmem_capacity_bytes", 0))
        if cap > 0:
            return cap
    except Exception:
        pass
    return 64 * 1024 * 1024        # conservative (v7x-sized) default


def _step_vmem_bytes(th, wo, cin, cout, out_bytes, cdt_bytes):
    """Rough per-grid-step VMEM footprint (double-buffered inputs/outputs)."""
    p_blk = 4 * (th + 1) * _round_up(wo + 1, 8) * _round_up(cin, 128) * cdt_bytes
    col = th * _round_up(wo, 8) * _round_up(9 * cin, 128) * cdt_bytes
    o_blk = _round_up(th * wo, 8) * _round_up(cout, 128) * out_bytes
    w_blk = _round_up(9 * cin, 8) * _round_up(cout, 128) * cdt_bytes
    ab_blk = 8 * _round_up(cout, 128) * 4
    return 2 * (p_blk + w_blk + ab_blk + o_blk) + col


def _pick_row_tile(ho, wo, cin, cout, out_bytes, cdt_bytes, budget):
    divs = [d for d in range(1, ho + 1) if ho % d == 0]
    fits = [d for d in divs
            if _step_vmem_bytes(d, wo, cin, cout, out_bytes, cdt_bytes) <= budget]
    if not fits:
        fits = [1]
    # Prefer >= 2 row tiles (pipeline overlap + both v7x TensorCores busy),
    # then 8-16 output rows per step, then the largest remaining candidate.
    multi = [d for d in fits if ho // d >= 2]
    cand = multi if multi else fits
    mid = [d for d in cand if 8 <= d <= 16]
    if mid:
        return max(mid)
    small = [d for d in cand if d < 8]
    return max(small) if small else min(cand)


# --------------------------------------------------------------------------
# Wrappers.
# --------------------------------------------------------------------------
@functools.partial(jax.jit,
                   static_argnames=("row_tile", "vmem_limit", "compute_dtype"))
def _conv2d_compress_nhwc_impl(x_nhwc, w_oihw, scale, bias, *, row_tile,
                               vmem_limit, compute_dtype):
    n, h, w, cin = x_nhwc.shape
    cout = w_oihw.shape[0]
    ho, wo = h // 2, w // 2
    th = row_tile
    t_tiles = ho // th

    # Conv weight -> one dense (9*Cin, Cout) MXU tile; K = (kh*3 + kw)*Cin + c.
    w2d = jnp.transpose(w_oihw, (2, 3, 1, 0)).reshape(9 * cin, cout)
    w2d = w2d.astype(compute_dtype)
    ab = jnp.stack([scale, bias]).astype(jnp.float32)          # (2, Cout)

    # Space-to-depth parity split + top/left zero pad + per-row-tile halo
    # duplication, all wrapper-side layout ops, in the compute dtype (bf16).
    x_c = x_nhwc.astype(compute_dtype)

    def parity(rh, rw):
        g = x_c[:, rh::2, rw::2, :]                            # (N, Ho, Wo, Cin)
        return jnp.pad(g, ((0, 0), (1, 0), (1, 0), (0, 0)))    # (N, Ho+1, Wo+1, Cin)

    def tile_rows(g):
        # (N, Ho+1, Wo+1, Cin) -> (N, T, th+1, Wo+1, Cin); tile t holds padded
        # rows [t*th, t*th + th] (the +1 halo row is duplicated across tiles).
        main = g[:, :ho].reshape(n, t_tiles, th, wo + 1, cin)
        halo = g[:, th::th][:, :, None]                        # (N, T, 1, Wo+1, Cin)
        return jnp.concatenate([main, halo], axis=2)

    planes = [tile_rows(parity(0, 0)), tile_rows(parity(0, 1)),
              tile_rows(parity(1, 0)), tile_rows(parity(1, 1))]
    p_all = jnp.stack(planes, axis=2)                          # (N, T, 4, th+1, Wo+1, Cin)
    p_all = p_all.reshape(n, t_tiles, 4 * (th + 1), wo + 1, cin)

    out = pl.pallas_call(
        conv2d_compress_kernel,
        out_shape=jax.ShapeDtypeStruct((n, t_tiles, th * wo, cout), x_nhwc.dtype),
        grid_spec=pltpu.PrefetchScalarGridSpec(
            num_scalar_prefetch=0,
            grid=(n, t_tiles),
            in_specs=[
                pl.BlockSpec((None, None, 4 * (th + 1), wo + 1, cin),
                             lambda g, t: (g, t, 0, 0, 0)),
                pl.BlockSpec((9 * cin, cout), lambda g, t: (0, 0)),
                pl.BlockSpec((2, cout), lambda g, t: (0, 0)),
            ],
            out_specs=pl.BlockSpec((None, None, th * wo, cout),
                                   lambda g, t: (g, t, 0, 0)),
            scratch_shapes=[pltpu.VMEM((th, wo, 9 * cin), compute_dtype)],
        ),
        compiler_params=pltpu.CompilerParams(
            dimension_semantics=("parallel", "parallel"),
            vmem_limit_bytes=vmem_limit,
        ),
    )(p_all, w2d, ab)

    # (N, T, th*Wo, Cout) -> (N, Ho, Wo, Cout): free metadata reshape.
    return out.reshape(n, ho, wo, cout)


def conv2d_compress_pallas_nhwc(x_nhwc, w_oihw, scale, bias, *, row_tile=None,
                                compute_dtype=jnp.bfloat16):
    """x_nhwc: (N, H, W, Cin).  w_oihw: (Cout, Cin, 3, 3) (PyTorch layout).
    scale/bias: (Cout,) folded eval-mode BN affine.  Returns NHWC output."""
    n, h, w, cin = x_nhwc.shape
    cout = w_oihw.shape[0]
    assert w_oihw.shape == (cout, cin, 3, 3), "only 3x3 kernels supported"
    assert h % 2 == 0 and w % 2 == 0, "stride-2 parity path requires even H, W"
    ho, wo = h // 2, w // 2

    # Generation-aware VMEM budget: ~48 MiB on v7x (64 MiB physical),
    # ~96 MiB on v5e/v6e (128 MiB physical).
    cap = _vmem_capacity_bytes()
    vmem_limit = int(max(16 << 20, min(cap * 3 // 4, 112 << 20)))
    cdt_bytes = jnp.dtype(compute_dtype).itemsize
    out_bytes = jnp.dtype(x_nhwc.dtype).itemsize
    th = row_tile if row_tile is not None else _pick_row_tile(
        ho, wo, cin, cout, out_bytes, cdt_bytes, int(vmem_limit * 0.9))
    assert ho % th == 0, "row_tile must divide Ho"

    return _conv2d_compress_nhwc_impl(x_nhwc, w_oihw, scale, bias, row_tile=th,
                                      vmem_limit=vmem_limit,
                                      compute_dtype=compute_dtype)


def conv2d_compress_pallas(x_nchw, w_oihw, scale, bias, *, row_tile=None,
                           compute_dtype=jnp.bfloat16):
    """PyTorch-parity entry point (NCHW in / NCHW out).  Prefer the NHWC entry
    point end-to-end to avoid the two boundary transposes."""
    y = conv2d_compress_pallas_nhwc(jnp.transpose(x_nchw, (0, 2, 3, 1)),
                                    w_oihw, scale, bias, row_tile=row_tile,
                                    compute_dtype=compute_dtype)
    return jnp.transpose(y, (0, 3, 1, 2))


def fold_bn(conv_bias, gamma, beta, running_mean, running_var, eps=1e-5):
    """Fold eval-mode BatchNorm2d (+ conv bias) into per-channel scale/bias."""
    scale = gamma / jnp.sqrt(running_var + eps)
    bias = (conv_bias - running_mean) * scale + beta
    return scale.astype(jnp.float32), bias.astype(jnp.float32)


def ref_conv2d_compress_nhwc(x_nhwc, w_oihw, scale, bias):
    """Plain-JAX reference (same folded-BN eval semantics, PyTorch padding)."""
    w_hwio = jnp.transpose(w_oihw, (2, 3, 1, 0))
    y = jax.lax.conv_general_dilated(
        x_nhwc, w_hwio, window_strides=(2, 2), padding=((1, 1), (1, 1)),
        dimension_numbers=("NHWC", "HWIO", "NHWC"),
        precision=jax.lax.Precision.HIGHEST)
    return jnp.maximum(y * scale + bias, 0.0)


if __name__ == "__main__":
    key = jax.random.PRNGKey(0)
    kx, kw, kb, kg, kbeta, km, kv = jax.random.split(key, 7)

    n, cin, h, w = 2, 4, 16, 16            # NCHW, as the PyTorch module sees it
    cout = 2 * cin                         # conv2d_compress: out = 2 * in_features

    x_nchw = jax.random.normal(kx, (n, cin, h, w), dtype=jnp.float32)
    w_conv = 0.1 * jax.random.normal(kw, (cout, cin, 3, 3), dtype=jnp.float32)
    b_conv = 0.1 * jax.random.normal(kb, (cout,), dtype=jnp.float32)
    gamma = jax.random.uniform(kg, (cout,), minval=0.5, maxval=1.5, dtype=jnp.float32)
    beta = 0.1 * jax.random.normal(kbeta, (cout,), dtype=jnp.float32)
    r_mean = 0.1 * jax.random.normal(km, (cout,), dtype=jnp.float32)
    r_var = jax.random.uniform(kv, (cout,), minval=0.5, maxval=1.5, dtype=jnp.float32)

    scale, bias = fold_bn(b_conv, gamma, beta, r_mean, r_var)

    out_nchw = conv2d_compress_pallas(x_nchw, w_conv, scale, bias)
    out_nchw = jax.block_until_ready(out_nchw)
    assert out_nchw.shape == (n, cout, h // 2, w // 2)

    # Reference with the same bf16-operand / f32-accumulate numerics as the kernel.
    x_nhwc = jnp.transpose(x_nchw, (0, 2, 3, 1))
    xq = x_nhwc.astype(jnp.bfloat16).astype(jnp.float32)
    wq = w_conv.astype(jnp.bfloat16).astype(jnp.float32)
    ref_nchw = jnp.transpose(
        ref_conv2d_compress_nhwc(xq, wq, scale, bias), (0, 3, 1, 2))

    if not jnp.allclose(out_nchw, ref_nchw, atol=1e-3, rtol=1e-3):
        max_err = jnp.max(jnp.abs(out_nchw - ref_nchw))
        raise AssertionError(f"kernel mismatch vs reference, max_err={max_err}")
    print("KERNEL_OK")
</pallas_src>

<mosaic_0001>
module attributes {stable_mosaic.version = 11 : i64} {
  func.func @conv2d_compress_kernel(%arg0: i32, %arg1: i32, %arg2: memref<1x1x20x9x4xbf16, #tpu.memory_space<vmem>>, %arg3: memref<36x8xbf16, #tpu.memory_space<vmem>>, %arg4: memref<2x8xf32, #tpu.memory_space<vmem>>, %arg5: memref<1x1x32x8xf32, #tpu.memory_space<vmem>>, %arg6: memref<4x8x36xbf16, #tpu.memory_space<vmem>>) attributes {dimension_semantics = [#tpu.dimension_semantics<parallel>, #tpu.dimension_semantics<parallel>], iteration_bounds = array<i64: 2, 2>, scalar_prefetch = 0 : i64, scratch_operands = 1 : i64, tpu.core_type = #tpu.core_type<tc>, window_params = [{transform_indices = @transform_0, window_bounds = array<i64: 1, 1, 20, 9, 4>}, {pipeline_mode = #tpu.pipeline_mode<synchronous>, transform_indices = @transform_1, window_bounds = array<i64: 36, 8>}, {pipeline_mode = #tpu.pipeline_mode<synchronous>, transform_indices = @transform_2, window_bounds = array<i64: 2, 8>}, {transform_indices = @transform_3, window_bounds = array<i64: 1, 1, 32, 8>}]} {
    %c0 = arith.constant 0 : index
    %c0_0 = arith.constant 0 : index
    %c15 = arith.constant 15 : index
    %c0_1 = arith.constant 0 : index
    %c0_2 = arith.constant 0 : index
    %0 = vector.load %arg2[%c0, %c0_0, %c15, %c0_1, %c0_2] : memref<1x1x20x9x4xbf16, #tpu.memory_space<vmem>>, vector<1x1x4x8x4xbf16>
    %1 = vector.shape_cast %0 : vector<1x1x4x8x4xbf16> to vector<4x8x4xbf16>
    %c0_3 = arith.constant 0 : index
    %c0_4 = arith.constant 0 : index
    %c0_5 = arith.constant 0 : index
    %2 = vector.load %arg6[%c0_3, %c0_4, %c0_5] : memref<4x8x36xbf16, #tpu.memory_space<vmem>>, vector<4x8x4xbf16>
    tpu.vector_store %arg6[%c0_3, %c0_4, %c0_5], %1 {strides = array<i32>} : memref<4x8x36xbf16, #tpu.memory_space<vmem>>, vector<4x8x4xbf16>,
    %c0_6 = arith.constant 0 : index
    %c0_7 = arith.constant 0 : index
    %c10 = arith.constant 10 : index
    %c1 = arith.constant 1 : index
    %c0_8 = arith.constant 0 : index
    %3 = vector.load %arg2[%c0_6, %c0_7, %c10, %c1, %c0_8] : memref<1x1x20x9x4xbf16, #tpu.memory_space<vmem>>, vector<1x1x4x8x4xbf16>
    %4 = vector.shape_cast %3 : vector<1x1x4x8x4xbf16> to vector<4x8x4xbf16>
    %c0_9 = arith.constant 0 : index
    %c0_10 = arith.constant 0 : index
    %c4 = arith.constant 4 : index
    %5 = vector.load %arg6[%c0_9, %c0_10, %c4] : memref<4x8x36xbf16, #tpu.memory_space<vmem>>, vector<4x8x4xbf16>
    tpu.vector_store %arg6[%c0_9, %c0_10, %c4], %4 {strides = array<i32>} : memref<4x8x36xbf16, #tpu.memory_space<vmem>>, vector<4x8x4xbf16>,
    %c0_11 = arith.constant 0 : index
    %c0_12 = arith.constant 0 : index
    %c15_13 = arith.constant 15 : index
    %c1_14 = arith.constant 1 : index
    %c0_15 = arith.constant 0 : index
    %6 = vector.load %arg2[%c0_11, %c0_12, %c15_13, %c1_14, %c0_15] : memref<1x1x20x9x4xbf16, #tpu.memory_space<vmem>>, vector<1x1x4x8x4xbf16>
    %7 = vector.shape_cast %6 : vector<1x1x4x8x4xbf16> to vector<4x8x4xbf16>
    %c0_16 = arith.constant 0 : index
    %c0_17 = arith.constant 0 : index
    %c8 = arith.constant 8 : index
    %8 = vector.load %arg6[%c0_16, %c0_17, %c8] : memref<4x8x36xbf16, #tpu.memory_space<vmem>>, vector<4x8x4xbf16>
    tpu.vector_store %arg6[%c0_16, %c0_17, %c8], %7 {strides = array<i32>} : memref<4x8x36xbf16, #tpu.memory_space<vmem>>, vector<4x8x4xbf16>,
    %c0_18 = arith.constant 0 : index
    %c0_19 = arith.constant 0 : index
    %c6 = arith.constant 6 : index
    %c0_20 = arith.constant 0 : index
    %c0_21 = arith.constant 0 : index
    %9 = vector.load %arg2[%c0_18, %c0_19, %c6, %c0_20, %c0_21] : memref<1x1x20x9x4xbf16, #tpu.memory_space<vmem>>, vector<1x1x4x8x4xbf16>
    %10 = vector.shape_cast %9 : vector<1x1x4x8x4xbf16> to vector<4x8x4xbf16>
    %c0_22 = arith.constant 0 : index
    %c0_23 = arith.constant 0 : index
    %c12 = arith.constant 12 : index
    %11 = vector.load %arg6[%c0_22, %c0_23, %c12] : memref<4x8x36xbf16, #tpu.memory_space<vmem>>, vector<4x8x4xbf16>
    tpu.vector_store %arg6[%c0_22, %c0_23, %c12], %10 {strides = array<i32>} : memref<4x8x36xbf16, #tpu.memory_space<vmem>>, vector<4x8x4xbf16>,
    %c0_24 = arith.constant 0 : index
    %c0_25 = arith.constant 0 : index
    %c1_26 = arith.constant 1 : index
    %c1_27 = arith.constant 1 : index
    %c0_28 = arith.constant 0 : index
    %12 = vector.load %arg2[%c0_24, %c0_25, %c1_26, %c1_27, %c0_28] : memref<1x1x20x9x4xbf16, #tpu.memory_space<vmem>>, vector<1x1x4x8x4xbf16>
    %13 = vector.shape_cast %12 : vector<1x1x4x8x4xbf16> to vector<4x8x4xbf16>
    %c0_29 = arith.constant 0 : index
    %c0_30 = arith.constant 0 : index
    %c16 = arith.constant 16 : index
    %14 = vector.load %arg6[%c0_29, %c0_30, %c16] : memref<4x8x36xbf16, #tpu.memory_space<vmem>>, vector<4x8x4xbf16>
    tpu.vector_store %arg6[%c0_29, %c0_30, %c16], %13 {strides = array<i32>} : memref<4x8x36xbf16, #tpu.memory_space<vmem>>, vector<4x8x4xbf16>,
    %c0_31 = arith.constant 0 : index
    %c0_32 = arith.constant 0 : index
    %c6_33 = arith.constant 6 : index
    %c1_34 = arith.constant 1 : index
    %c0_35 = arith.constant 0 : index
    %15 = vector.load %arg2[%c0_31, %c0_32, %c6_33, %c1_34, %c0_35] : memref<1x1x20x9x4xbf16, #tpu.memory_space<vmem>>, vector<1x1x4x8x4xbf16>
    %16 = vector.shape_cast %15 : vector<1x1x4x8x4xbf16> to vector<4x8x4xbf16>
    %c0_36 = arith.constant 0 : index
    %c0_37 = arith.constant 0 : index
    %c20 = arith.constant 20 : index
    %17 = vector.load %arg6[%c0_36, %c0_37, %c20] : memref<4x8x36xbf16, #tpu.memory_space<vmem>>, vector<4x8x4xbf16>
    tpu.vector_store %arg6[%c0_36, %c0_37, %c20], %16 {strides = array<i32>} : memref<4x8x36xbf16, #tpu.memory_space<vmem>>, vector<4x8x4xbf16>,
    %c0_38 = arith.constant 0 : index
    %c0_39 = arith.constant 0 : index
    %c16_40 = arith.constant 16 : index
    %c0_41 = arith.constant 0 : index
    %c0_42 = arith.constant 0 : index
    %18 = vector.load %arg2[%c0_38, %c0_39, %c16_40, %c0_41, %c0_42] : memref<1x1x20x9x4xbf16, #tpu.memory_space<vmem>>, vector<1x1x4x8x4xbf16>
    %19 = vector.shape_cast %18 : vector<1x1x4x8x4xbf16> to vector<4x8x4xbf16>
    %c0_43 = arith.constant 0 : index
    %c0_44 = arith.constant 0 : index
    %c24 = arith.constant 24 : index
    %20 = vector.load %arg6[%c0_43, %c0_44, %c24] : memref<4x8x36xbf16, #tpu.memory_space<vmem>>, vector<4x8x4xbf16>
    tpu.vector_store %arg6[%c0_43, %c0_44, %c24], %19 {strides = array<i32>} : memref<4x8x36xbf16, #tpu.memory_space<vmem>>, vector<4x8x4xbf16>,
    %c0_45 = arith.constant 0 : index
    %c0_46 = arith.constant 0 : index
    %c11 = arith.constant 11 : index
    %c1_47 = arith.constant 1 : index
    %c0_48 = arith.constant 0 : index
    %21 = vector.load %arg2[%c0_45, %c0_46, %c11, %c1_47, %c0_48] : memref<1x1x20x9x4xbf16, #tpu.memory_space<vmem>>, vector<1x1x4x8x4xbf16>
    %22 = vector.shape_cast %21 : vector<1x1x4x8x4xbf16> to vector<4x8x4xbf16>
    %c0_49 = arith.constant 0 : index
    %c0_50 = arith.constant 0 : index
    %c28 = arith.constant 28 : index
    %23 = vector.load %arg6[%c0_49, %c0_50, %c28] : memref<4x8x36xbf16, #tpu.memory_space<vmem>>, vector<4x8x4xbf16>
    tpu.vector_store %arg6[%c0_49, %c0_50, %c28], %22 {strides = array<i32>} : memref<4x8x36xbf16, #tpu.memory_space<vmem>>, vector<4x8x4xbf16>,
    %c0_51 = arith.constant 0 : index
    %c0_52 = arith.constant 0 : index
    %c16_53 = arith.constant 16 : index
    %c1_54 = arith.constant 1 : index
    %c0_55 = arith.constant 0 : index
    %24 = vector.load %arg2[%c0_51, %c0_52, %c16_53, %c1_54, %c0_55] : memref<1x1x20x9x4xbf16, #tpu.memory_space<vmem>>, vector<1x1x4x8x4xbf16>
    %25 = vector.shape_cast %24 : vector<1x1x4x8x4xbf16> to vector<4x8x4xbf16>
    %c0_56 = arith.constant 0 : index
    %c0_57 = arith.constant 0 : index
    %c32 = arith.constant 32 : index
    %26 = vector.load %arg6[%c0_56, %c0_57, %c32] : memref<4x8x36xbf16, #tpu.memory_space<vmem>>, vector<4x8x4xbf16>
    tpu.vector_store %arg6[%c0_56, %c0_57, %c32], %25 {strides = array<i32>} : memref<4x8x36xbf16, #tpu.memory_space<vmem>>, vector<4x8x4xbf16>,
    %c0_58 = arith.constant 0 : index
    %c0_59 = arith.constant 0 : index
    %c0_60 = arith.constant 0 : index
    %27 = vector.load %arg6[%c0_58, %c0_59, %c0_60] : memref<4x8x36xbf16, #tpu.memory_space<vmem>>, vector<4x8x36xbf16>
    %28 = vector.shape_cast %27 : vector<4x8x36xbf16> to vector<32x36xbf16>
    %c0_61 = arith.constant 0 : index
    %c0_62 = arith.constant 0 : index
    %29 = vector.load %arg3[%c0_61, %c0_62] : memref<36x8xbf16, #tpu.memory_space<vmem>>, vector<36x8xbf16>
    %cst = arith.constant dense<0.000000e+00> : vector<32x8xf32>
    %30 = tpu.matmul %28, %29, %cst {dimension_numbers = #tpu.dot_dimension_numbers<[1], [0], [0], [1], [0, 0, 1, 1], [], []>} : vector<32x36xbf16>, vector<36x8xbf16>, vector<32x8xf32> -> vector<32x8xf32>
    %c0_63 = arith.constant 0 : index
    %c0_64 = arith.constant 0 : index
    %31 = vector.load %arg4[%c0_63, %c0_64] : memref<2x8xf32, #tpu.memory_space<vmem>>, vector<1x8xf32>
    %32 = vector.broadcast %31 : vector<1x8xf32> to vector<32x8xf32>
    %33 = arith.mulf %30, %32 : vector<32x8xf32>
    %c1_65 = arith.constant 1 : index
    %c0_66 = arith.constant 0 : index
    %34 = vector.load %arg4[%c1_65, %c0_66] : memref<2x8xf32, #tpu.memory_space<vmem>>, vector<1x8xf32>
    %35 = vector.broadcast %34 : vector<1x8xf32> to vector<32x8xf32>
    %36 = arith.addf %33, %35 : vector<32x8xf32>
    %cst_67 = arith.constant 0.000000e+00 : f32
    %37 = vector.broadcast %cst_67 : f32 to vector<32x8xf32>
    %38 = arith.maximumf %36, %37 : vector<32x8xf32>
    %c0_68 = arith.constant 0 : index
    %c0_69 = arith.constant 0 : index
    %c0_70 = arith.constant 0 : index
    %c0_71 = arith.constant 0 : index
    %39 = vector.load %arg5[%c0_68, %c0_69, %c0_70, %c0_71] : memref<1x1x32x8xf32, #tpu.memory_space<vmem>>, vector<1x1x32x8xf32>
    %40 = vector.shape_cast %39 : vector<1x1x32x8xf32> to vector<32x8xf32>
    %41 = vector.shape_cast %38 : vector<32x8xf32> to vector<1x1x32x8xf32>
    tpu.vector_store %arg5[%c0_68, %c0_69, %c0_70, %c0_71], %41 {strides = array<i32>} : memref<1x1x32x8xf32, #tpu.memory_space<vmem>>, vector<1x1x32x8xf32>,
    return
  }
  func.func @transform_0(%arg0: i32, %arg1: i32) -> (i32, i32, i32, i32, i32) {
    %c0_i32 = arith.constant 0 : i32
    %c0_i32_0 = arith.constant 0 : i32
    %c0_i32_1 = arith.constant 0 : i32
    %c0_i32_2 = arith.constant 0 : i32
    return %arg0, %arg1, %c0_i32, %c0_i32_0, %c0_i32_1 : i32, i32, i32, i32, i32
  }
  func.func @transform_1(%arg0: i32, %arg1: i32) -> (i32, i32) {
    %c0_i32 = arith.constant 0 : i32
    %c0_i32_0 = arith.constant 0 : i32
    %c0_i32_1 = arith.constant 0 : i32
    return %c0_i32, %c0_i32_0 : i32, i32
  }
  func.func @transform_2(%arg0: i32, %arg1: i32) -> (i32, i32) {
    %c0_i32 = arith.constant 0 : i32
    %c0_i32_0 = arith.constant 0 : i32
    %c0_i32_1 = arith.constant 0 : i32
    return %c0_i32, %c0_i32_0 : i32, i32
  }
  func.func @transform_3(%arg0: i32, %arg1: i32) -> (i32, i32, i32, i32) {
    %c0_i32 = arith.constant 0 : i32
    %c0_i32_0 = arith.constant 0 : i32
    %c0_i32_1 = arith.constant 0 : i32
    return %arg0, %arg1, %c0_i32, %c0_i32_0 : i32, i32, i32, i32
  }
}

</mosaic_0001>

<bundles_post_ra>
// kernel: _conv2d_compress_nhwc_impl.1
= control target key start
LH: loop header
LB: loop body
LE: loop exit
PB: predicated region body
PF: predicated region fallthrough
CT: control target
= control target key end

     0   :  { %8 = vsyncpa [#allocation4], 0  ;;  %s1589_s0 = inlined_call_operand.vmem [shape: bf16[2,2,20,9,4], index: 0, kind: input, shape index: {}]   ;;  %s1590_s1 = inlined_call_operand.vmem [shape: bf16[36,8], index: 1, kind: input, shape index: {}]   ;;  %s1591_s2 = inlined_call_operand.vmem [shape: f32[2,8], index: 2, kind: input, shape index: {}]   ;;  %s1592_s3 = inlined_call_operand.hbm [shape: f32[2,2,32,8], index: 3, kind: output, shape index: {}]  }
   0x1   :  { %10 = vsyncpa [#allocation4 + $0x1], 0  ;;  %s1285_s12 = smov 0   ;;  %s1287_s13 = smov 0  }
   0x2   :  { %s1289_s14 = smov 0   ;;  %s1291_s15 = smov 0  }
   0x3   :  { %s1293_s16 = smov 0   ;;  %s1295_s17 = smov 0  }
   0x4   :  { %s1297_s18 = smov 0   ;;  %s1299_s19 = smov 0  }
   0x5 LB: > { %s974_s20 = sadd.s32 4294967295, %s1253_s19   ;;  %s975_s21 = sadd.s32 4294967294, %s1253_s19   ;;  %s1253_s19 = sphi %s1299_s19, %s16_s19   ;;  %s1249_s18 = sphi %s1297_s18, %s1603_s18   ;;  %s1245_s17 = sphi %s1295_s17, %s1602_s17   ;;  %s1241_s16 = sphi %s1293_s16, %s1601_s16   ;;  %s1237_s15 = sphi %s1291_s15, %s1600_s15   ;;  %s1233_s14 = sphi %s1289_s14, %s1599_s14   ;;  %s1229_s13 = sphi %s1287_s13, %s1598_s13   ;;  %s1225_s12 = sphi %s1285_s12, %s1597_s12  }
   0x6   : > { %s25_s22 = sadd.s32 1, %s1245_s17  ;;  %s28_s23 = sadd.s32 1, %s1249_s18 }
   0x7   : > { %p26_p0 = scmp.ge.s32.totalorder %s25_s22, 2  ;;  %p117_p1 = scmp.ne.s32.totalorder %s1233_s14, %s1229_s13 }
   0x8   : > { %p118_p2 = scmp.eq.s32.totalorder %s974_s20, 3  ;;  %p123_p5 = scmp.ne.s32.totalorder %s1229_s13, %s1225_s12 }
   0x9   : > { %s1605_s22 = smov (%p26_p0, %s25_s22), 0  ;;  %s1607_s23 = smov (!%p26_p0, %s28_s23), %s1249_s18 }
   0xa   : > { %s103_s24 = ssub.s32 %s1245_s17, %s1605_s22  ;;  %p1336_p3 = por %p118_p2, %p117_p1 }
   0xb   : > { %p30_p4 = scmp.ge.s32.totalorder %s1607_s23, 2  ;;  %p124_p6 = scmp.eq.s32.totalorder %s975_s21, 3 }
   0xc   : > { %p978_p7 = scmp.ge.s32.totalorder %s1253_s19, 1  ;;  %p160_p9 = scmp.lt.s32.totalorder %s1253_s19, 5 }
   0xd   : > { %s1609_s23 = smov (%p30_p4, %s1607_s23), 0  ;;  %p1345_p8 = por %p124_p6, %p123_p5 }
   0xe   : > { %s102_s27 = ssub.s32 %s1249_s18, %s1609_s23  ;;  %s107_s28 = sadd.s32 1, %s1233_s14 }
   0xf   : > { %s104_s29 = sor.u32 %s103_s24, %s102_s27  ;;  %p161_p10 = pnand %p978_p7, %p160_p9 }
  0x10   : > { %p105_p11 = scmp.eq.s32.totalorder %s104_s29, 0  ;;  %p188_p12 = scmp.lt.s32.totalorder (!%p161_p10), %s1241_s16, 1  ;;  %vm217_vm0 = vsmask.f32 (!%p161_p10), 3328  ;;  %vm218_vm1 = vsmask.f32 (!%p161_p10), 7440 }
  0x11   : > { %164 = sbr.rel (%p161_p10) target bundleno = 460 (0x1cc), region = 32  ;;  %p190_p13 = scmp.lt.s32.totalorder (!%p161_p10), %s1237_s15, 1  ;;  %vm1378_vm2 = vmor (!%p161_p10), %vm217_vm0, %vm218_vm1  ;;  %vm203_vm3 = vcmask (!%p161_p10), 27648   ;;  %vm793_vm4 = vcmask (!%p161_p10), 1041408   ;;  %vm288_vm5 = vcmask (!%p161_p10), 60448   ;;  %vm369_vm6 = vcmask (!%p161_p10), 93248  }
  0x12   : > { %s1354_s30 = scalar_select %p105_p11, %s1233_s14, %s107_s28  }
  0x13   : > { %s1255_s21 = smov (!%p161_p10), 12   ;;  %s1256_s24 = smov (!%p161_p10), 4   ;;  %vm395_vm7 = vcmask (!%p161_p10), 126048   ;;  %vm477_vm8 = vcmask (!%p161_p10), 158848   ;;  %vm558_vm9 = vcmask (!%p161_p10), 191648   ;;  %vm584_vm10 = vcmask (!%p161_p10), 224448  }
  0x14   : > { %s1257_s27 = smov (!%p161_p10), 8   ;;  %s1258_s28 = smov (!%p161_p10), 16   ;;  %vm666_vm11 = vcmask (!%p161_p10), 257248   ;;  %vm747_vm12 = vcmask (!%p161_p10), 290048   ;;  %vm786_vm13 = vcmask (!%p161_p10), 293888   ;;  %vm868_vm14 = vcmask (!%p161_p10), 64512  }
  0x15   : > { %s1259_s29 = smov (!%p161_p10), 20  }
  0x18   : > { %s189_s4 = scalar_select %p188_p12, %s1241_s16, 1 }
  0x19   : > { %s191_s5 = scalar_select %p190_p13, %s1237_s15, 1 }
  0x1a   : > { %s1073_s6 = smul.u32 80, %s189_s4  ;;  %s1260_s4 = smov 24  }
  0x1b   : > { %s1072_s7 = smul.u32 40, %s191_s5 }
  0x1d   : > { %s194_s8 = sadd.s32 %s1073_s6, %s1072_s7  ;;  %s1261_s7 = smov 28  }
  0x1e   : > { %s980_s9 = sshll.u32 %s194_s8, 2 }
  0x1f   : > { %s1363_s20 = scalar_lea.vmem %s1589_s0, %s980_s9 }
  0x20   : > { %v1002_v0 = vld [vmem:[%s1363_s20 + $0x38] sm:$0xf]  ;;  %v1001_v1 = vld [vmem:[%s1363_s20 + $0x30] sm:$0xf]  ;;  %v989_v2 = vld [vmem:[%s1363_s20 + $0x60] sm:$0xf] }
  0x21   : > { %385 = vrot.lane.b32.xlu1 %v1002_v0, %s1255_s21  ;;  %383 = vrot.lane.b32.xlu0 %v1001_v1, %s1255_s21  ;;  %v990_v3 = vld [vmem:[%s1363_s20 + $0x64] sm:$0x1]  ;;  %v249_v4 = vshrl.u32 %v989_v2, 16  ;;  %v252_v5 = vshll.u32 %v989_v2, 16  ;;  %v985_v6 = vld [vmem:[%s1363_s20 + $0x50] sm:$0xf] }
  0x22   : > { %v258_v7 = vshll.u32 %v990_v3, 16  ;;  %v986_v8 = vld [vmem:[%s1363_s20 + $0x54] sm:$0x1]  ;;  %v221_v9 = vshrl.u32 %v985_v6, 16  ;;  %v224_v10 = vshll.u32 %v985_v6, 16 }
  0x23   : > { %v251_v11 = vrot.slane %v249_v4, 4  ;;  %v254_v12 = vrot.slane %v252_v5, 5  ;;  %v230_v13 = vshll.u32 %v986_v8, 16  ;;  %v991_v14 = vld [vmem:[%s1363_s20 + $0x68] sm:$0xf] }
  0x24   : > { %v260_v15 = vrot.slane %v258_v7, 5  ;;  %v223_v16 = vrot.slane %v221_v9, 4  ;;  %v226_v17 = vrot.slane %v224_v10, 5  ;;  %v992_v18 = vld [vmem:[%s1363_s20 + $0x6c] sm:$0x1]  ;;  %v263_v19 = vshrl.u32 %v991_v14, 16 }
  0x25   : > { %v255_v20 = vor.u32 %v254_v12, %v251_v11  ;;  %v232_v21 = vrot.slane %v230_v13, 5  ;;  %v266_v22 = vshll.u32 %v991_v14, 16  ;;  %v272_v23 = vshll.u32 %v992_v18, 16  ;;  %v987_v24 = vld [vmem:[%s1363_s20 + $0x58] sm:$0xf] }
  0x26   : > { %v227_v26 = vor.u32 %v226_v17, %v223_v16  ;;  %v265_v27 = vrot.slane %v263_v19, 4  ;;  %v988_v28 = vld [vmem:[%s1363_s20 + $0x5c] sm:$0x1]  ;;  %v235_v29 = vshrl.u32 %v987_v24, 16  ;;  %v238_v30 = vshll.u32 %v987_v24, 16 }
  0x27   : > { %v256_v31 = vrot.slane %v255_v20, 4  ;;  %v268_v32 = vrot.slane %v266_v22, 5  ;;  %v274_v33 = vrot.slane %v272_v23, 5  ;;  %v244_v34 = vshll.u32 %v988_v28, 16  ;;  %v995_v35 = vld [vmem:[%s1363_s20 + $0x80] sm:$0xf] }
  0x28   : > { %v228_v36 = vrot.slane %v227_v26, 4  ;;  %v237_v37 = vrot.slane %v235_v29, 4  ;;  %v240_v38 = vrot.slane %v238_v30, 5  ;;  %v996_v39 = vld [vmem:[%s1363_s20 + $0x84] sm:$0x1]  ;;  %v316_v40 = vshrl.u32 %v995_v35, 16 }
  0x29   : > { %v261_v41 = vsel %vm1378_vm2, %v256_v31, %v260_v15  ;;  %v269_v42 = vor.u32 %v268_v32, %v265_v27  ;;  %v246_v43 = vrot.slane %v244_v34, 5  ;;  %v319_v44 = vshll.u32 %v995_v35, 16  ;;  %v993_v45 = vld [vmem:[%s1363_s20 + $0x78] sm:$0xf]  ;;  %v994_v46 = vld [vmem:[%s1363_s20 + $0x7c] sm:$0x1] }
  0x2a   : > { %280 = vrot.lane.b32.xlu1 %v261_v41, %s1256_s24  ;;  %v233_v47 = vsel %vm1378_vm2, %v228_v36, %v232_v21  ;;  %v241_v48 = vor.u32 %v240_v38, %v237_v37  ;;  %v318_v49 = vrot.slane %v316_v40, 4  ;;  %v325_v50 = vshll.u32 %v996_v39, 16  ;;  %v999_v51 = vld [vmem:[%s1363_s20 + $0x90] sm:$0xf]  ;;  %v1000_v56 = vld [vmem:[%s1363_s20 + $0x94] sm:$0x1] }
  0x2b   : > { %276 = vrot.lane.b32.xlu0 %v233_v47, %s1256_s24  ;;  %v270_v52 = vrot.slane %v269_v42, 4  ;;  %v321_v53 = vrot.slane %v319_v44, 5  ;;  %v302_v54 = vshrl.u32 %v993_v45, 16  ;;  %v305_v55 = vshll.u32 %v993_v45, 16  ;;  %v997_v61 = vld [vmem:[%s1363_s20 + $0x88] sm:$0xf] }
  0x2c   : > { %v242_v57 = vrot.slane %v241_v48, 4  ;;  %v327_v58 = vrot.slane %v325_v50, 5  ;;  %v311_v59 = vshll.u32 %v994_v46, 16  ;;  %v344_v60 = vshrl.u32 %v999_v51, 16  ;;  %v998_v2 = vld [vmem:[%s1363_s20 + $0x8c] sm:$0x1] }
  0x2d   : > { %v275_v62 = vsel %vm1378_vm2, %v270_v52, %v274_v33  ;;  %v322_v63 = vor.u32 %v321_v53, %v318_v49  ;;  %v304_v0 = vrot.slane %v302_v54, 4  ;;  %v307_v1 = vrot.slane %v305_v55, 5  ;;  %v1007_v7 = vld [vmem:[%s1363_s20 + $0x10] sm:$0xf]  ;;  %v1008_v12 = vld [vmem:[%s1363_s20 + $0x14] sm:$0x1] }
  0x2e   : > { %282 = vrot.lane.b32.xlu1 %v275_v62, %s1256_s24  ;;  %v247_v3 = vsel %vm1378_vm2, %v242_v57, %v246_v43  ;;  %v313_v4 = vrot.slane %v311_v59, 5  ;;  %v346_v5 = vrot.slane %v344_v60, 4  ;;  %v347_v6 = vshll.u32 %v999_v51, 16  ;;  %v1005_v17 = vld [vmem:[%s1363_s20 + $0x8] sm:$0xf] }
  0x2f   : > { %278 = vrot.lane.b32.xlu0 %v247_v3, %s1256_s24  ;;  %v323_v8 = vrot.slane %v322_v63, 4  ;;  %v308_v9 = vor.u32 %v307_v1, %v304_v0  ;;  %v353_v10 = vshll.u32 %v1000_v56, 16  ;;  %v330_v11 = vshrl.u32 %v997_v61, 16  ;;  %v1006_v26 = vld [vmem:[%s1363_s20 + $0xc] sm:$0x1] }
  0x30   : > { %v349_v13 = vrot.slane %v347_v6, 5  ;;  %v333_v14 = vshll.u32 %v997_v61, 16  ;;  %v339_v15 = vshll.u32 %v998_v2, 16  ;;  %v424_v16 = vshrl.u32 %v1007_v7, 16  ;;  %v1011_v27 = vld [vmem:[%s1363_s20 + $0x20] sm:$0xf] }
  0x31   : > { %v328_v18 = vsel %vm1378_vm2, %v323_v8, %v327_v58  ;;  %v309_v19 = vrot.slane %v308_v9, 4  ;;  %v355_v20 = vrot.slane %v353_v10, 5  ;;  %v332_v21 = vrot.slane %v330_v11, 4  ;;  %v1012_v36 = vld [vmem:[%s1363_s20 + $0x24] sm:$0x1] }
  0x32   : > { %359 = vrot.lane.b32.xlu1 %v328_v18, %s1257_s27  ;;  %v350_v22 = vor.u32 %v349_v13, %v346_v5  ;;  %v335_v23 = vrot.slane %v333_v14, 5  ;;  %v426_v24 = vrot.slane %v424_v16, 4  ;;  %v427_v29 = vshll.u32 %v1007_v7, 16  ;;  %v1009_v41 = vld [vmem:[%s1363_s20 + $0x18] sm:$0xf] }
  0x33   : > { %v314_v28 = vsel %vm1378_vm2, %v309_v19, %v313_v4  ;;  %v433_v30 = vshll.u32 %v1008_v12, 16  ;;  %v410_v31 = vshrl.u32 %v1005_v17, 16  ;;  %v341_v34 = vrot.slane %v339_v15, 5  ;;  %v1010_v46 = vld [vmem:[%s1363_s20 + $0x1c] sm:$0x1] }
  0x34   : > { %357 = vrot.lane.b32.xlu0 %v314_v28, %s1257_s27  ;;  %v351_v32 = vrot.slane %v350_v22, 4  ;;  %v336_v33 = vor.u32 %v335_v23, %v332_v21  ;;  %v413_v35 = vshll.u32 %v1005_v17, 16  ;;  %v429_v37 = vrot.slane %v427_v29, 5  ;;  %v1015_v51 = vld [vmem:[%s1363_s20 + $0x38] sm:$0xf] }
  0x35   : > { %v412_v38 = vrot.slane %v410_v31, 4  ;;  %v419_v39 = vshll.u32 %v1006_v26, 16  ;;  %v452_v40 = vshrl.u32 %v1011_v27, 16  ;;  %v435_v44 = vrot.slane %v433_v30, 5  ;;  %v1004_v53 = vld [vmem:[%s1363_s20 + $0x48] sm:$0xf] }
  0x36   : > { %v356_v42 = vsel %vm1378_vm2, %v351_v32, %v355_v20  ;;  %v337_v43 = vrot.slane %v336_v33, 4  ;;  %v415_v45 = vrot.slane %v413_v35, 5  ;;  %v430_v47 = vor.u32 %v429_v37, %v426_v24  ;;  %v1003_v54 = vld [vmem:[%s1363_s20 + $0x40] sm:$0xf]  ;;  %v1016_v62 = vld [vmem:[%s1363_s20 + $0x3c] sm:$0x1] }
  0x37   : > { %363 = vrot.lane.b32.xlu1 %v356_v42, %s1257_s27  ;;  %v454_v48 = vrot.slane %v452_v40, 4  ;;  %v455_v49 = vshll.u32 %v1011_v27, 16  ;;  %v461_v50 = vshll.u32 %v1012_v36, 16  ;;  %v438_v56 = vshrl.u32 %v1009_v41, 16  ;;  %v1013_v3 = vld [vmem:[%s1363_s20 + $0x30] sm:$0xf] }
  0x38   : > { %v342_v52 = vsel %vm1378_vm2, %v337_v43, %v341_v34  ;;  %v416_v55 = vor.u32 %v415_v45, %v412_v38  ;;  %v441_v57 = vshll.u32 %v1009_v41, 16  ;;  %v431_v58 = vrot.slane %v430_v47, 4  ;;  %v1014_v8 = vld [vmem:[%s1363_s20 + $0x34] sm:$0x1]  ;;  %v1019_v9 = vld [vmem:[%s1363_s20 + $0x48] sm:$0xf] }
  0x39   : > { %361 = vrot.lane.b32.xlu0 %v342_v52, %s1257_s27  ;;  %v421_v59 = vrot.slane %v419_v39, 5  ;;  %v457_v60 = vrot.slane %v455_v49, 5  ;;  %v447_v61 = vshll.u32 %v1010_v46, 16  ;;  %v440_v0 = vrot.slane %v438_v56, 4  ;;  %v1020_v18 = vld [vmem:[%s1363_s20 + $0x4c] sm:$0x1] }
  0x3a   : > { %v417_v63 = vrot.slane %v416_v55, 4  ;;  %v443_v1 = vrot.slane %v441_v57, 5  ;;  %v505_v2 = vshrl.u32 %v1015_v51, 16  ;;  %v436_v4 = vsel %vm1378_vm2, %v431_v58, %v435_v44  ;;  %v1017_v23 = vld [vmem:[%s1363_s20 + $0x40] sm:$0xf] }
  0x3b   : > { %389 = vrot.lane.b32.xlu1 %v1004_v53, %s1255_s21  ;;  %v458_v5 = vor.u32 %v457_v60, %v454_v48  ;;  %v463_v6 = vrot.slane %v461_v50, 5  ;;  %v508_v7 = vshll.u32 %v1015_v51, 16  ;;  %v449_v11 = vrot.slane %v447_v61, 5  ;;  %v1018_v29 = vld [vmem:[%s1363_s20 + $0x44] sm:$0x1] }
  0x3c   : > { %v444_v10 = vor.u32 %v443_v1, %v440_v0  ;;  %v507_v12 = vrot.slane %v505_v2, 4  ;;  %v514_v13 = vshll.u32 %v1016_v62, 16  ;;  %v491_v16 = vshrl.u32 %v1013_v3, 16  ;;  %v1027_v34 = vld [vmem:[%s1363_s20 + $0x60] sm:$0xf] }
  0x3d   : > { %387 = vrot.lane.b32.xlu0 %v1003_v54, %s1255_s21  ;;  %v459_v14 = vrot.slane %v458_v5, 4  ;;  %v510_v15 = vrot.slane %v508_v7, 5  ;;  %v494_v17 = vshll.u32 %v1013_v3, 16  ;;  %v422_v19 = vsel %vm1378_vm2, %v417_v63, %v421_v59  ;;  %v1025_v43 = vld [vmem:[%s1363_s20 + $0x58] sm:$0xf]  ;;  %s185_s21 = sand.u32 1, %s1229_s13  }
  0x3e   : > { %v445_v20 = vrot.slane %v444_v10, 4  ;;  %v500_v21 = vshll.u32 %v1014_v8, 16  ;;  %v533_v22 = vshrl.u32 %v1019_v9, 16  ;;  %v516_v26 = vrot.slane %v514_v13, 5  ;;  %v1031_v51 = vld [vmem:[%s1363_s20 + $0x70] sm:$0xf] }
  0x3f   : > { %467 = vrot.lane.b32.xlu1 %v436_v4, %s1258_s28  ;;  %v511_v24 = vor.u32 %v510_v15, %v507_v12  ;;  %v493_v27 = vrot.slane %v491_v16, 4  ;;  %v496_v28 = vrot.slane %v494_v17, 5  ;;  %v464_v30 = vsel %vm1378_vm2, %v459_v14, %v463_v6  ;;  %v1028_v58 = vld [vmem:[%s1363_s20 + $0x64] sm:$0x1]  ;;  %v1029_v63 = vld [vmem:[%s1363_s20 + $0x68] sm:$0xf] }
  0x40   : > { %v450_v31 = vsel %vm1378_vm2, %v445_v20, %v449_v11  ;;  %v535_v32 = vrot.slane %v533_v22, 4  ;;  %v536_v33 = vshll.u32 %v1019_v9, 16  ;;  %v542_v37 = vshll.u32 %v1020_v18, 16  ;;  %v1026_v2 = vld [vmem:[%s1363_s20 + $0x5c] sm:$0x1]  ;;  %s979_s5 = sshll.u32 %s185_s21, 5 }
  0x41   : > { %465 = vrot.lane.b32.xlu0 %v422_v19, %s1258_s28  ;;  %v512_v35 = vrot.slane %v511_v24, 4  ;;  %v497_v36 = vor.u32 %v496_v28, %v493_v27  ;;  %v519_v38 = vshrl.u32 %v1017_v23, 16  ;;  %v502_v39 = vrot.slane %v500_v21, 5  ;;  %v1035_v6 = vld [vmem:[%s1363_s20 + $0x88] sm:$0xf]  ;;  %s1536_s24 = scalar_lea.sflag [#allocation4], %s185_s21 }
  0x42   : > { %v538_v40 = vrot.slane %v536_v33, 5  ;;  %v522_v41 = vshll.u32 %v1017_v23, 16  ;;  %v528_v42 = vshll.u32 %v1018_v29, 16  ;;  %v613_v46 = vshrl.u32 %v1027_v34, 16  ;;  %v1022_v8 = vld [vmem:[%s1363_s20 + $0x88] sm:$0xf] }
  0x43   : > { %471 = vrot.lane.b32.xlu1 %v464_v30, %s1258_s28  ;;  %v498_v44 = vrot.slane %v497_v36, 4  ;;  %v521_v45 = vrot.slane %v519_v38, 4  ;;  %v517_v47 = vsel %vm1378_vm2, %v512_v35, %v516_v26  ;;  %v544_v49 = vrot.slane %v542_v37, 5  ;;  %v1032_v14 = vld [vmem:[%s1363_s20 + $0x74] sm:$0x1] }
  0x44   : > { %v539_v48 = vor.u32 %v538_v40, %v535_v32  ;;  %v524_v50 = vrot.slane %v522_v41, 5  ;;  %v530_v52 = vrot.slane %v528_v42, 5  ;;  %v616_v53 = vshll.u32 %v1027_v34, 16  ;;  %v1021_v17 = vld [vmem:[%s1363_s20 + $0x80] sm:$0xf] }
  0x45   : > { %469 = vrot.lane.b32.xlu0 %v450_v31, %s1258_s28  ;;  %v599_v54 = vshrl.u32 %v1025_v43, 16  ;;  %v503_v55 = vsel %vm1378_vm2, %v498_v44, %v502_v39  ;;  %v602_v59 = vshll.u32 %v1025_v43, 16  ;;  %v615_v60 = vrot.slane %v613_v46, 4  ;;  %v1030_v18 = vld [vmem:[%s1363_s20 + $0x6c] sm:$0x1] }
  0x46   : > { %v540_v56 = vrot.slane %v539_v48, 4  ;;  %v525_v57 = vor.u32 %v524_v50, %v521_v45  ;;  %v618_v61 = vrot.slane %v616_v53, 5  ;;  %v641_v62 = vshrl.u32 %v1031_v51, 16  ;;  %v1033_v21 = vld [vmem:[%s1363_s20 + $0x80] sm:$0xf] }
  0x47   : > { %548 = vrot.lane.b32.xlu1 %v517_v47, %s1259_s29  ;;  %v601_v3 = vrot.slane %v599_v54, 4  ;;  %v604_v4 = vrot.slane %v602_v59, 5  ;;  %v644_v5 = vshll.u32 %v1031_v51, 16  ;;  %v622_v9 = vshll.u32 %v1028_v58, 16  ;;  %v1039_v22 = vld [vmem:[%s1363_s20 + $0x98] sm:$0xf] }
  0x48   : > { %v545_v0 = vsel %vm1378_vm2, %v540_v56, %v544_v49  ;;  %v526_v1 = vrot.slane %v525_v57, 4  ;;  %v627_v10 = vshrl.u32 %v1029_v63, 16  ;;  %v630_v11 = vshll.u32 %v1029_v63, 16  ;;  %v983_v27 = vld [vmem:[%s1363_s20 + $0x88] sm:$0xf]  ;;  %v1154_v57 = vld [vmem:[%s1590_s1] sm:$0xff]  }
  0x49   : > { %546 = vrot.lane.b32.xlu0 %v503_v55, %s1259_s29  ;;  %v619_v12 = vor.u32 %v618_v61, %v615_v60  ;;  %v608_v13 = vshll.u32 %v1026_v2, 16  ;;  %v643_v15 = vrot.slane %v641_v62, 4  ;;  %v646_v16 = vrot.slane %v644_v5, 5  ;;  %v981_v28 = vld [vmem:[%s1363_s20 + $0x78] sm:$0xf]  ;;  %1061 = vmatprep.subr.bf16.mxu0 %v1154_v57 }
  0x4a   : > { %v531_v7 = vsel %vm1378_vm2, %v526_v1, %v530_v52  ;;  %v629_v19 = vrot.slane %v627_v10, 4  ;;  %v694_v20 = vshrl.u32 %v1035_v6, 16  ;;  %v605_v23 = vor.u32 %v604_v4, %v601_v3  ;;  %v1024_v29 = vld [vmem:[%s1363_s20 + $0x98] sm:$0xf]  ;;  %206 = vst.msk [vmem:[#allocation2 + $0x8] sm:$0xf] %vm203_vm3, %v983_v27  ;;  %1062 = vmatpush3.bf16.msra.mxu0 %v1154_v57 }
  0x4b   : > { %552 = vrot.lane.b32.xlu1 %v545_v0, %s1259_s29  ;;  %v632_v24 = vrot.slane %v630_v11, 5  ;;  %v697_v26 = vshll.u32 %v1035_v6, 16  ;;  %v624_v30 = vrot.slane %v622_v9, 5  ;;  %v650_v31 = vshll.u32 %v1032_v14, 16  ;;  %204 = vst.msk [vmem:[#allocation2] sm:$0xf] %vm203_vm3, %v981_v28 }
  0x4c   : > { %v984_v32 = vld [vmem:[%s1363_s20 + $0x90] sm:$0xf]  ;;  %v982_v33 = vld [vmem:[%s1363_s20 + $0x80] sm:$0xf]  ;;  %v620_v34 = vrot.slane %v619_v12, 4  ;;  %v647_v35 = vor.u32 %v646_v16, %v643_v15  ;;  %v680_v37 = vshrl.u32 %v1033_v21, 16 }
  0x4d   : > { %550 = vrot.lane.b32.xlu0 %v531_v7, %s1259_s29  ;;  %v1036_v36 = vld [vmem:[%s1363_s20 + $0x8c] sm:$0x1]  ;;  %v683_v38 = vshll.u32 %v1033_v21, 16  ;;  %207 = vst.msk [vmem:[#allocation2 + $0xc] sm:$0xf] %vm203_vm3, %v984_v32  ;;  %v696_v39 = vrot.slane %v694_v20, 4  ;;  %v633_v45 = vor.u32 %v632_v24, %v629_v19 }
  0x4e   : > { %205 = vst.msk [vmem:[#allocation2 + $0x4] sm:$0xf] %vm203_vm3, %v982_v33  ;;  %v699_v40 = vrot.slane %v697_v26, 5  ;;  %v722_v41 = vshrl.u32 %v1039_v22, 16  ;;  %v1037_v42 = vld [vmem:[%s1363_s20 + $0x90] sm:$0xf]  ;;  %v625_v52 = vsel %vm1378_vm2, %v620_v34, %v624_v30 }
  0x4f   : > { %574 = vrot.lane.b32.xlu1 %v1022_v8, %s1260_s4  ;;  %v606_v43 = vrot.slane %v605_v23, 4  ;;  %v610_v44 = vrot.slane %v608_v13, 5  ;;  %v636_v46 = vshll.u32 %v1030_v18, 16  ;;  %v1023_v47 = vld [vmem:[%s1363_s20 + $0x90] sm:$0xf]  ;;  %v652_v48 = vrot.slane %v650_v31, 5 }
  0x50   : > { %v682_v49 = vrot.slane %v680_v37, 4  ;;  %v685_v50 = vrot.slane %v683_v38, 5  ;;  %v725_v51 = vshll.u32 %v1039_v22, 16  ;;  %v648_v53 = vrot.slane %v647_v35, 4  ;;  %v1034_v55 = vld [vmem:[%s1363_s20 + $0x84] sm:$0x1] }
  0x51   : > { %572 = vrot.lane.b32.xlu0 %v1021_v17, %s1260_s4  ;;  %v703_v54 = vshll.u32 %v1036_v36, 16  ;;  %v708_v56 = vshrl.u32 %v1037_v42, 16  ;;  %v700_v58 = vor.u32 %v699_v40, %v696_v39  ;;  %v724_v59 = vrot.slane %v722_v41, 4  ;;  %v1040_v1 = vld [vmem:[%s1363_s20 + $0x9c] sm:$0x1]  ;;  %v1155_v9 = vld [vmem:[%s1590_s1 + $0x8] sm:$0xff]  }
  0x52   : > { %v727_v60 = vrot.slane %v725_v51, 5  ;;  %v711_v61 = vshll.u32 %v1037_v42, 16  ;;  %v611_v62 = vsel %vm1378_vm2, %v606_v43, %v610_v44  ;;  %v634_v63 = vrot.slane %v633_v45, 4  ;;  %v1038_v8 = vld [vmem:[%s1363_s20 + $0x94] sm:$0x1]  ;;  %1063 = vmatprep.subr.bf16.mxu0 %v1155_v9  ;;  %s1262_s20 = smov 32  }
  0x53   : > { %578 = vrot.lane.b32.xlu1 %v1024_v29, %s1260_s4  ;;  %v638_v0 = vrot.slane %v636_v46, 5  ;;  %v686_v2 = vor.u32 %v685_v50, %v682_v49  ;;  %v689_v3 = vshll.u32 %v1034_v55, 16  ;;  %v710_v4 = vrot.slane %v708_v56, 4  ;;  %v1156_v13 = vld [vmem:[%s1590_s1 + $0x10] ss:$0 sps:$4 sm:$0x33]   ;;  %1064 = vmatpush3.bf16.msra.mxu0 %v1155_v9 }
  0x54   : > { %v713_v5 = vrot.slane %v711_v61, 5  ;;  %v653_v6 = vsel %vm1378_vm2, %v648_v53, %v652_v48  ;;  %v705_v7 = vrot.slane %v703_v54, 5  ;;  %v701_v10 = vrot.slane %v700_v58, 4  ;;  %1071 = vmatprep.subr.msk.bf16.mxu0 %vm793_vm4, %v1156_v13  ;;  %s1051_s29 = sshll.u32 %s1237_s15, 2  ;;  %s187_s15 = scalar_lea.vmem [#allocation3], %s979_s5 }
  0x55   : > { %576 = vrot.lane.b32.xlu0 %v1023_v47, %s1260_s4  ;;  %v728_v11 = vor.u32 %v727_v60, %v724_v59  ;;  %v731_v12 = vshll.u32 %v1040_v1, 16  ;;  %v639_v14 = vsel %vm1378_vm2, %v634_v63, %v638_v0  ;;  %v687_v15 = vrot.slane %v686_v2, 4  ;;  %s1052_s4 = sshll.u32 %s1241_s16, 3  ;;  %v1049_v0 = vld [vmem:[%s1591_s2 + $0x1] ss:$0 sm:$0xff]  ;;  %s889_s16 = sshll.u32 %s187_s15, 4  ;;  %s1524_s16 = int_to_ptr.vmem [resolvable:$true] %s889_s16 }
  0x56   : > { %v691_v16 = vrot.slane %v689_v3, 5  ;;  %v714_v17 = vor.u32 %v713_v5, %v710_v4  ;;  %v717_v18 = vshll.u32 %v1038_v8, 16  ;;  %v706_v19 = vsel %vm1378_vm2, %v701_v10, %v705_v7  ;;  %s886_s8 = sadd.s32 %s1052_s4, %s1051_s29  ;;  %s1159_s28 = scalar_lea.vmem %s1524_s16, 512 }
  0x57   : > { %656 = vrot.lane.b32.xlu1 %v625_v52, %s1261_s7  ;;  %v729_v20 = vrot.slane %v728_v11, 4  ;;  %v733_v21 = vrot.slane %v731_v12, 5  ;;  %v795_v22 = vsel %vm793_vm4, %v1156_v13, 0  ;;  %s1053_s9 = sshll.u32 %s886_s8, 7  ;;  %p1160_p0 = scmp.ne.s32.totalorder %s1524_s16, %s1159_s28 }
  0x58   : > { %v692_v23 = vsel %vm1378_vm2, %v687_v15, %v691_v16  ;;  %v715_v24 = vrot.slane %v714_v17, 4  ;;  %v719_v26 = vrot.slane %v717_v18, 5  ;;  %1066 = vmatpush3.bf16.msra.mxu0 %v795_v22  ;;  %s1263_s29 = smov [#allocation3]  }
  0x59   : > { %654 = vrot.lane.b32.xlu0 %v611_v62, %s1261_s7  ;;  %v734_v27 = vsel %vm1378_vm2, %v729_v20, %v733_v21  ;;  %v1048_v62 = vld [vmem:[%s1591_s2] ss:$0 sm:$0xff]  ;;  %p1161_p1 = pnand %p1160_p0, %p1336_p3  ;;  %s1163_s4 = sshll.u32 %s1263_s29, 4  ;;  %s1164_s4 = int_to_ptr.vmem [resolvable:$false] %s1163_s4 }
  0x5a   : > { %v720_v28 = vsel %vm1378_vm2, %v715_v24, %v719_v26  ;;  %s1165_s5 = scalar_lea.vmem %s1164_s4, 1024  ;;  %p1166_p4 = scmp.lt.s32.totalorder %s1524_s16, %s1164_s4 }
  0x5b   : > { %660 = vrot.lane.b32.xlu1 %v653_v6, %s1261_s7  ;;  %p1162_p2 = pneg %p1161_p1  ;;  %p1167_p5 = scmp.lt.s32.totalorder %s1165_s5, %s1159_s28 }
  0x5d   : > { %658 = vrot.lane.b32.xlu0 %v639_v14, %s1261_s7  ;;  %p1168_p6 = por %p1167_p5, %p1166_p4 }
  0x5f   : > { %737 = vrot.lane.b32.xlu1 %v706_v19, %s1262_s20  ;;  %p1169_p7 = pnand %p1168_p6, %p1162_p2 }
  0x61   : > { %735 = vrot.lane.b32.xlu0 %v692_v23, %s1262_s20 }
  0x63   : > { %741 = vrot.lane.b32.xlu1 %v734_v27, %s1262_s20 }
  0x65   : > { %739 = vrot.lane.b32.xlu0 %v720_v28, %s1262_s20  ;;  %s1530_s20 = scalar_lea.hbm %s1592_s3, %s1053_s9 }
  0x93   : > { %v386_v29 = vpop.permute.xlu1 %385  ;;  %v384_v30 = vpop.permute.xlu0 %383 }
  0x9c   : > { %v281_v31 = vpop.permute.xlu1 %280 }
  0x9d   : > { %291 = vst.msk [vmem:[#allocation2 + $0x8] sm:$0xf] %vm288_vm5, %v281_v31  ;;  %v277_v32 = vpop.permute.xlu0 %276 }
  0x9e   : > { %289 = vst.msk [vmem:[#allocation2] sm:$0xf] %vm288_vm5, %v277_v32 }
  0xa0   : > { %v283_v33 = vpop.permute.xlu1 %282 }
  0xa1   : > { %292 = vst.msk [vmem:[#allocation2 + $0xc] sm:$0xf] %vm288_vm5, %v283_v33  ;;  %v279_v34 = vpop.permute.xlu0 %278 }
  0xa2   : > { %290 = vst.msk [vmem:[#allocation2 + $0x4] sm:$0xf] %vm288_vm5, %v279_v34 }
  0xa4   : > { %v360_v35 = vpop.permute.xlu1 %359 }
  0xa5   : > { %371 = vst.msk [vmem:[#allocation2 + $0x4] sm:$0xf] %vm369_vm6, %v360_v35 }
  0xa6   : > { %v358_v36 = vpop.permute.xlu0 %357  ;;  %397 = vst.msk [vmem:[#allocation2 + $0x4] sm:$0xf] %vm395_vm7, %v386_v29 }
  0xa7   : > { %370 = vst.msk [vmem:[#allocation2] sm:$0xf] %vm369_vm6, %v358_v36 }
  0xa8   : > { %396 = vst.msk [vmem:[#allocation2] sm:$0xf] %vm395_vm7, %v384_v30 }
  0xa9   : > { %v364_v25 = vpop.permute.xlu1 %363 }
  0xaa   : > { %373 = vst.msk [vmem:[#allocation2 + $0xc] sm:$0xf] %vm369_vm6, %v364_v25 }
  0xab   : > { %v362_v37 = vpop.permute.xlu0 %361 }
  0xac   : > { %372 = vst.msk [vmem:[#allocation2 + $0x8] sm:$0xf] %vm369_vm6, %v362_v37 }
  0xad   : > { %v390_v38 = vpop.permute.xlu1 %389 }
  0xae   : > { %399 = vst.msk [vmem:[#allocation2 + $0xc] sm:$0xf] %vm395_vm7, %v390_v38 }
  0xaf   : > { %v388_v39 = vpop.permute.xlu0 %387 }
  0xb0   : > { %398 = vst.msk [vmem:[#allocation2 + $0x8] sm:$0xf] %vm395_vm7, %v388_v39 }
  0xb1   : > { %v468_v40 = vpop.permute.xlu1 %467 }
  0xb2   : > { %479 = vst.msk [vmem:[#allocation2 + $0x4] sm:$0xf] %vm477_vm8, %v468_v40 }
  0xb3   : > { %v466_v41 = vpop.permute.xlu0 %465 }
  0xb4   : > { %478 = vst.msk [vmem:[#allocation2] sm:$0xf] %vm477_vm8, %v466_v41 }
  0xb5   : > { %v472_v42 = vpop.permute.xlu1 %471 }
  0xb6   : > { %481 = vst.msk [vmem:[#allocation2 + $0xc] sm:$0xf] %vm477_vm8, %v472_v42 }
  0xb7   : > { %v470_v43 = vpop.permute.xlu0 %469 }
  0xb8   : > { %480 = vst.msk [vmem:[#allocation2 + $0x8] sm:$0xf] %vm477_vm8, %v470_v43 }
  0xb9   : > { %v549_v44 = vpop.permute.xlu1 %548 }
  0xba   : > { %560 = vst.msk [vmem:[#allocation2 + $0x4] sm:$0xf] %vm558_vm9, %v549_v44 }
  0xbb   : > { %v547_v45 = vpop.permute.xlu0 %546 }
  0xbc   : > { %559 = vst.msk [vmem:[#allocation2] sm:$0xf] %vm558_vm9, %v547_v45 }
  0xbd   : > { %v553_v46 = vpop.permute.xlu1 %552 }
  0xbe   : > { %562 = vst.msk [vmem:[#allocation2 + $0xc] sm:$0xf] %vm558_vm9, %v553_v46 }
  0xbf   : > { %v551_v47 = vpop.permute.xlu0 %550 }
  0xc0   : > { %561 = vst.msk [vmem:[#allocation2 + $0x8] sm:$0xf] %vm558_vm9, %v551_v47 }
  0xc1   : > { %v575_v48 = vpop.permute.xlu1 %574 }
  0xc2   : > { %586 = vst.msk [vmem:[#allocation2 + $0x4] sm:$0xf] %vm584_vm10, %v575_v48 }
  0xc3   : > { %v573_v49 = vpop.permute.xlu0 %572 }
  0xc4   : > { %585 = vst.msk [vmem:[#allocation2] sm:$0xf] %vm584_vm10, %v573_v49 }
  0xc5   : > { %v579_v50 = vpop.permute.xlu1 %578 }
  0xc6   : > { %588 = vst.msk [vmem:[#allocation2 + $0xc] sm:$0xf] %vm584_vm10, %v579_v50 }
  0xc7   : > { %v577_v51 = vpop.permute.xlu0 %576 }
  0xc8   : > { %587 = vst.msk [vmem:[#allocation2 + $0x8] sm:$0xf] %vm584_vm10, %v577_v51 }
  0xc9   : > { %v657_v52 = vpop.permute.xlu1 %656 }
  0xca   : > { %668 = vst.msk [vmem:[#allocation2 + $0x4] sm:$0xf] %vm666_vm11, %v657_v52 }
  0xcb   : > { %v655_v53 = vpop.permute.xlu0 %654 }
  0xcc   : > { %667 = vst.msk [vmem:[#allocation2] sm:$0xf] %vm666_vm11, %v655_v53 }
  0xcd   : > { %v661_v54 = vpop.permute.xlu1 %660 }
  0xce   : > { %670 = vst.msk [vmem:[#allocation2 + $0xc] sm:$0xf] %vm666_vm11, %v661_v54 }
  0xcf   : > { %v659_v55 = vpop.permute.xlu0 %658 }
  0xd0   : > { %669 = vst.msk [vmem:[#allocation2 + $0x8] sm:$0xf] %vm666_vm11, %v659_v55 }
  0xd1   : > { %v738_v56 = vpop.permute.xlu1 %737 }
  0xd2   : > { %749 = vst.msk [vmem:[#allocation2 + $0x4] sm:$0xf] %vm747_vm12, %v738_v56 }
  0xd3   : > { %v736_v57 = vpop.permute.xlu0 %735 }
  0xd4   : > { %748 = vst.msk [vmem:[#allocation2] sm:$0xf] %vm747_vm12, %v736_v57 }
  0xd5   : > { %v742_v58 = vpop.permute.xlu1 %741 }
  0xd6   : > { %751 = vst.msk [vmem:[#allocation2 + $0xc] sm:$0xf] %vm747_vm12, %v742_v58 }
  0xd7   : > { %v740_v59 = vpop.permute.xlu0 %739 }
  0xd8   : > { %750 = vst.msk [vmem:[#allocation2 + $0x8] sm:$0xf] %vm747_vm12, %v740_v59 }
  0xdb   : > { %v1157_v60 = vld [vmem:[#allocation2] sm:$0xff]  }
  0xdc   : > { %1067 = vmatprep.mubr.msk.bf16.mxu0 %vm786_vm13, %v1157_v60 }
  0xdf   : > { %v1158_v61 = vld [vmem:[#allocation2 + $0x8] sm:$0xff]  }
  0xe0   : > { %1068 = vmatmul.mubr.msk.bf16.vlgmr.msra.gmra.mrb[0].mxu0 %vm786_vm13, %v1158_v61 }
 0x1b3   : > { %v1069_v63 = vpop.f32.mrb[0].mxu0 }
 0x1b4   : > { %v853_v1 = vmul.f32 %v1069_v63, %v1048_v62  ;;  %v831_v2 = vpop.f32.mrb[1].mxu0 }
 0x1b5   : > { %v851_v3 = vmul.f32 %v1048_v62, %v831_v2  ;;  %v1070_v4 = vpop.f32.mrb[2].mxu0 }
 0x1b6   : > { %v862_v5 = vadd.f32 %v1049_v0, %v853_v1  ;;  %v854_v6 = vmul.f32 %v1070_v4, %v1048_v62  ;;  %v834_v7 = vpop.f32.mrb[3].mxu0 }
 0x1b7   : > { %v860_v8 = vadd.f32 %v1049_v0, %v851_v3  ;;  %v852_v9 = vmul.f32 %v1048_v62, %v834_v7 }
 0x1b8   : > { %v866_v10 = vmax.f32 %v862_v5, 0.0  ;;  %v863_v11 = vadd.f32 %v1049_v0, %v854_v6 }
 0x1b9   : > { %v864_v12 = vmax.f32 %v860_v8, 0.0  ;;  %v861_v13 = vadd.f32 %v1049_v0, %v852_v9 }
 0x1ba   : > { %871 = vst.msk [vmem:[%s187_s15 + $0x10] sm:$0xff] %vm868_vm14, %v866_v10  ;;  %v867_v14 = vmax.f32 %v863_v11, 0.0 }
 0x1bb   : > { %869 = vst.msk [vmem:[%s187_s15] sm:$0xff] %vm868_vm14, %v864_v12  ;;  %v865_v15 = vmax.f32 %v861_v13, 0.0 }
 0x1bc   : > { %872 = vst.msk [vmem:[%s187_s15 + $0x18] sm:$0xff] %vm868_vm14, %v867_v14 }
 0x1bd   : > { %870 = vst.msk [vmem:[%s187_s15 + $0x8] sm:$0xff] %vm868_vm14, %v865_v15 }
 0x1be   : > { %1172 = shalt.err (!%p1169_p7)
}
 0x1bf   : > { %s1173_s21 = scalar_lea.hbm %s1530_s20, 512  ;;  %s1177_s8 = scalar_lea.hbm %s1592_s3, 2048 }
 0x1c0   : > { %p1174_p9 = scmp.ne.s32.totalorder %s1530_s20, %s1173_s21  ;;  %p1178_p12 = scmp.lt.u32.totalorder %s1530_s20, %s1592_s3 }
 0x1c1   : > { %p1179_p13 = scmp.lt.u32.totalorder %s1177_s8, %s1173_s21  ;;  %p1181_p1 = scmp.lt.u32.totalorder %s1173_s21, %s1530_s20 }
 0x1c2   : > { %p1175_p10 = pnand %p1174_p9, %p1336_p3 }
 0x1c3   : > { %p1180_p0 = por %p1179_p13, %p1178_p12 }
 0x1c4   : > { %p1176_p11 = pneg %p1175_p10 }
 0x1c5   : > { %p1182_p2 = por %p1181_p1, %p1180_p0 }
 0x1c7   : > { %p1183_p4 = pnand %p1182_p2, %p1176_p11 }
 0x1c9   : > { %1186 = shalt.err (!%p1183_p4)
}
 0x1ca   : > { %s1264_s10 = smov 128  }
 0x1cb   : > { %1074 = dma.vmem_to_hbm [thread:$0]  (%p1336_p3), %s1524_s16, 512, %s1530_s20, %s1536_s24, %s1264_s10, %s1264_s10, %s1257_s27  }
 0x1cc PF: > { %p1080_p5 = scmp.ge.s32.totalorder %s1253_s19, 2  ;;  %s904_s11 = sand.u32 1, %s1225_s12  }
 0x1cd   : > { %s905_s28 = scalar_lea.sflag [#allocation4], %s904_s11 }
 0x1ce   : > { %p1077_p6 = pnand %p1080_p5, %p1345_p8 }
 0x1d0   : > { %1220 = dma.done.wait (!%p1077_p6), %s905_s28, 512  }
 0x1d1   : > { %1222 = vsyncadd (!%p1077_p6), %s905_s28, 4294966784  ;;  %s16_s19 = sadd.s32 1, %s1253_s19   ;;  %s1597_s12 = smov %s1229_s13 }
 0x1d2   : > { %p13_p7 = scmp.ge.s32.totalorder %s16_s19, 6   ;;  %s1598_s13 = smov %s1233_s14 }
 0x1d3   : > { %s1599_s14 = smov %s1354_s30  ;;  %s1600_s15 = smov %s1245_s17 }
 0x1d4   : > { %s1601_s16 = smov %s1249_s18  ;;  %s1602_s17 = smov %s1605_s22 }
 0x1d5   : > { %s1603_s18 = smov %s1609_s23  ;;  %15 = sbr.rel (!%p13_p7) target bundleno = 5 (0x5), region = 73 }
 0x1dc   :  { %910 = vsyncpa [#allocation4], 1 }
 0x1dd   :  { %912 = vsyncpa [#allocation4 + $0x1], 1 }

</bundles_post_ra>
